<compile_context>
chip_gen: v6e
topology: v6e:2x2x1
jax: 0.10.0
libtpu: 0.0.40
codegen_flags: <defaults>
</compile_context>

<pallas_src>
import functools
import math

import jax
import jax.numpy as jnp
from jax import lax
from jax.experimental import pallas as pl
from jax.experimental.pallas import tpu as pltpu

_PI = math.pi

# Operand dtype for MXU matmuls.  f32 keeps bit-level parity with the f32
# reference (the MXU is nowhere near the bottleneck at these shapes).  On
# v6e / v7x set to jnp.bfloat16 for full-rate MXU; element-wise math stays f32.
MXU_DTYPE = jnp.float32


# ----------------------------- in-kernel helpers -----------------------------

def _mm(a, b):
    """a @ b with f32 accumulation on the MXU (operands cast to MXU_DTYPE)."""
    return lax.dot_general(a.astype(MXU_DTYPE), b.astype(MXU_DTYPE),
                           (((1,), (0,)), ((), ())),
                           preferred_element_type=jnp.float32)


def _mm_t(a, b):
    """a @ b.T with f32 accumulation on the MXU (no explicit transpose)."""
    return lax.dot_general(a.astype(MXU_DTYPE), b.astype(MXU_DTYPE),
                           (((1,), (1,)), ((), ())),
                           preferred_element_type=jnp.float32)


def _acos(x):
    """arccos via A&S 4.4.45-style degree-7 polynomial (|err| <= ~2e-8)."""
    ax = jnp.abs(x)
    p = jnp.float32(-0.0012624911)
    for c in (0.0066700901, -0.0170881256, 0.0308918810,
              -0.0501743046, 0.0889789874, -0.2145988016, 1.5707963050):
        p = p * ax + jnp.float32(c)
    r = jnp.sqrt(jnp.maximum(1.0 - ax, 0.0)) * p
    return jnp.where(x < 0.0, _PI - r, r)


# ------------------------------ diag kernel ----------------------------------

def _diag_kernel(a_ref, x_ref, inv_rs_ref, inv_cs_ref, d_ref, *,
                 num_mlp_layers, scale):
    a = a_ref[...]                      # (n, n)
    x = x_ref[...]                      # (n, d)
    n = a.shape[0]

    sigma = _mm_t(x, x) + 1e-4          # X X^T + 1e-4
    sigma = _mm_t(_mm(a, sigma), a)     # A sigma A^T
    if scale == "degree":
        # Precomputed 1/row-degree (n, 1) and 1/col-degree (1, n): one VPU
        # multiply, no in-kernel XLU reductions over A.
        sigma = sigma * (inv_rs_ref[...] * inv_cs_ref[...])

    rows = lax.broadcasted_iota(jnp.int32, (n, n), 0)
    cols = lax.broadcasted_iota(jnp.int32, (n, n), 1)
    eye = (rows == cols).astype(jnp.float32)

    for l in range(num_mlp_layers):
        masked = sigma * eye
        # sigma is symmetric, so both reductions hold the same values; they are
        # kept (n-wide, negligible) to avoid an in-kernel (1, n) relayout.
        diag_row = jnp.sum(masked, axis=0, keepdims=True)   # (1, n)
        diag_col = jnp.sum(masked, axis=1, keepdims=True)   # (n, 1)
        dg_row = jnp.sqrt(diag_row)
        d_ref[pl.ds(l, 1), :] = dg_row
        tmp = jnp.sqrt(diag_col) * dg_row
        s = jnp.clip(sigma / tmp, -0.9999, 0.9999)
        ac = _acos(s)
        s = (s * (_PI - ac) + jnp.sqrt(1.0 - s * s)) / _PI
        sigma = s * tmp


def _diag_call(A, X, num_mlp_layers, scale):
    G, n, _ = A.shape
    d = X.shape[-1]
    if scale == "degree":
        # Safe: the wrapper adds 1e-4*I, so degrees are strictly positive.
        inv_rs = (1.0 / jnp.sum(A, axis=2))[..., None]       # (G, n, 1)
        inv_cs = (1.0 / jnp.sum(A, axis=1))[:, None, :]      # (G, 1, n)
    else:
        inv_rs = jnp.ones((G, n, 1), jnp.float32)
        inv_cs = jnp.ones((G, 1, n), jnp.float32)

    kernel = functools.partial(_diag_kernel,
                               num_mlp_layers=num_mlp_layers, scale=scale)
    return pl.pallas_call(
        kernel,
        out_shape=jax.ShapeDtypeStruct((G, num_mlp_layers, n), jnp.float32),
        grid=(G,),
        in_specs=[
            pl.BlockSpec((None, n, n), lambda i: (i, 0, 0)),
            pl.BlockSpec((None, n, d), lambda i: (i, 0, 0)),
            pl.BlockSpec((None, n, 1), lambda i: (i, 0, 0)),
            pl.BlockSpec((None, 1, n), lambda i: (i, 0, 0)),
        ],
        out_specs=pl.BlockSpec((None, num_mlp_layers, n), lambda i: (i, 0, 0)),
        compiler_params=pltpu.CompilerParams(dimension_semantics=("parallel",)),
    )(A, X, inv_rs, inv_cs)


# ------------------------------ pair kernel ----------------------------------

def _pair_kernel(a_l_ref, x_l_ref, dcol_ref, sl_inv_ref, sl_pow_ref,
                 a_r_ref, x_r_ref, drow_ref, sr_inv_ref, sr_pow_ref,
                 gl_ref, gr_ref, o_ref, *,
                 num_layers, num_mlp_layers, scale):
    a_l = a_l_ref[...]                  # (IP, IP) block-diagonal left adjacency
    x_l = x_l_ref[...]                  # (IP, d)  packed left features
    a_r = a_r_ref[...]                  # (LP, LP) block-diagonal right adjacency
    x_r = x_r_ref[...]                  # (LP, d)  packed right features

    # All i_blk x j_blk graph pairs of this block in one dense tile.
    sigma = _mm_t(x_l, x_r) + 1e-4              # (IP, LP)
    sigma = _mm_t(_mm(a_l, sigma), a_r)         # A_L sigma A_R^T (block-diag)

    if scale == "degree":
        sigma = sigma * (sl_inv_ref[...] * sr_inv_ref[...])   # rank-1 scale

    ntk = sigma
    dcol = dcol_ref[...]                # (IP, m) left diag, layer along lanes
    drow = drow_ref[...]                # (m, LP) right diag, layer along sublanes

    for l in range(num_mlp_layers):
        tmp = dcol[:, l:l + 1] * drow[l:l + 1, :] + 1e-6
        s = jnp.clip(sigma / tmp, -0.9999, 0.9999)
        ac = _acos(s)
        ds = (_PI - ac) / _PI
        sn = (s * (_PI - ac) + jnp.sqrt(1.0 - s * s)) / _PI
        ntk = ntk * ds + sn
        sigma = sn * tmp

    for _ in range(1, num_layers):
        ntk = _mm_t(_mm(a_l, ntk), a_r)         # A_L ntk A_R^T

    if scale == "degree" and num_layers > 1:
        # Precomputed scale_mat ** (num_layers - 1) as a rank-1 product.
        ntk = ntk * (sl_pow_ref[...] * sr_pow_ref[...])

    # Per-pair mean reduction as two small MXU matmuls: the right group matrix
    # carries the 1/(n * n') weights (zero on node/graph padding); the left
    # group matrix is a 0/1 sublane-slab indicator (pre-transposed).
    per_r = _mm(ntk, gr_ref[...])               # (IP, j_blk)
    o_ref[...] = _mm(gl_ref[...], per_r)        # (i_blk, j_blk)


def _pair_call(A_L, X_L, diag_L, rights, num_layers, num_mlp_layers, scale):
    """rights: list of (A, X, diag) groups of right-hand graphs (fused
    K_SS / K_ST => rights = [(A_S, X_S, diag_S), (A_T, X_T, diag_T)]).
    Returns K of shape (N_L, total number of right graphs)."""
    NL, n, _ = A_L.shape
    d = X_L.shape[-1]
    m = num_mlp_layers
    n_r = max(A.shape[1] for A, _, _ in rights)
    NR = sum(A.shape[0] for A, _, _ in rights)

    # Lane packing (right graphs) and sublane packing (left graphs): aim for
    # ~128-wide tiles in both directions, capped at the actual graph counts.
    j_blk = max(1, min(128 // n_r if n_r < 128 else 1, NR))
    i_blk = max(1, min(128 // n if n < 128 else 1, NL))
    NJ = -(-NR // j_blk)
    NI = -(-NL // i_blk)
    NR_pad, NL_pad = NJ * j_blk, NI * i_blk
    LP, IP = j_blk * n_r, i_blk * n

    # ---- right-side packing --------------------------------------------------
    a_parts, x_parts, dg_parts, w_parts = [], [], [], []
    for (A_R, X_R, D_R) in rights:
        g, nn, _ = A_R.shape
        pad = n_r - nn
        a_parts.append(jnp.pad(A_R, ((0, 0), (0, pad), (0, pad))))
        x_parts.append(jnp.pad(X_R, ((0, 0), (0, pad), (0, 0))))
        dg_parts.append(jnp.pad(D_R, ((0, 0), (0, 0), (0, pad)),
                                constant_values=1.0))
        valid = jnp.pad(jnp.ones((g, nn), jnp.float32), ((0, 0), (0, pad)))
        w_parts.append(valid / float(n * nn))      # 1/(n * n') mean weights
    gpad = NR_pad - NR
    A_R = jnp.pad(jnp.concatenate(a_parts, 0), ((0, gpad), (0, 0), (0, 0)))
    X_R = jnp.pad(jnp.concatenate(x_parts, 0), ((0, gpad), (0, 0), (0, 0)))
    D_R = jnp.pad(jnp.concatenate(dg_parts, 0), ((0, gpad), (0, 0), (0, 0)),
                  constant_values=1.0)
    colw = jnp.pad(jnp.concatenate(w_parts, 0), ((0, gpad), (0, 0)))

    eye_j = jnp.eye(j_blk, dtype=jnp.float32)
    A_Rbd = jnp.einsum("gjab,jk->gjakb", A_R.reshape(NJ, j_blk, n_r, n_r),
                       eye_j).reshape(NJ, LP, LP)
    X_Rp = X_R.reshape(NJ, LP, d)
    D_Rp = jnp.transpose(D_R.reshape(NJ, j_blk, m, n_r),
                         (0, 2, 1, 3)).reshape(NJ, m, LP)
    # Right lane-group reduction matrix with the mean weights folded in.
    GR = jnp.einsum("gjb,jk->gjbk", colw.reshape(NJ, j_blk, n_r),
                    eye_j).reshape(NJ, LP, j_blk)

    # ---- left-side packing ---------------------------------------------------
    lpad = NL_pad - NL
    A_Lp = jnp.pad(A_L, ((0, lpad), (0, 0), (0, 0)))
    X_Lf = jnp.pad(X_L, ((0, lpad), (0, 0), (0, 0)))
    D_Lp = jnp.pad(diag_L, ((0, lpad), (0, 0), (0, 0)), constant_values=1.0)

    eye_i = jnp.eye(i_blk, dtype=jnp.float32)
    A_Lbd = jnp.einsum("gjab,jk->gjakb", A_Lp.reshape(NI, i_blk, n, n),
                       eye_i).reshape(NI, IP, IP)
    X_Lp = X_Lf.reshape(NI, IP, d)
    dcol_L = jnp.transpose(D_Lp.reshape(NI, i_blk, m, n),
                           (0, 1, 3, 2)).reshape(NI, IP, m)
    # Left sublane-group indicator, pre-transposed: (i_blk, IP).
    lane = jnp.arange(IP)[None, :]
    grp = jnp.arange(i_blk)[:, None]
    GL = ((lane >= grp * n) & (lane < (grp + 1) * n)).astype(jnp.float32)

    # Degree-scale vectors precomputed in JAX (removes in-kernel reductions and
    # the (num_layers-1)-fold trailing scale multiplies).  Zero on padding.
    if scale == "degree":
        deg_l = jnp.sum(A_Lp, axis=2)                              # (NL_pad, n)
        sl_inv_f = jnp.where(deg_l > 0, 1.0 / deg_l, 0.0)
        sl_inv = sl_inv_f.reshape(NI, IP, 1)
        sl_pow = (sl_inv_f ** (num_layers - 1)).reshape(NI, IP, 1)
        deg_r = jnp.sum(A_R, axis=1)                               # (NR_pad, n_r)
        sr_inv_f = jnp.where(deg_r > 0, 1.0 / deg_r, 0.0)
        sr_inv = sr_inv_f.reshape(NJ, 1, LP)
        sr_pow = (sr_inv_f ** (num_layers - 1)).reshape(NJ, 1, LP)
    else:
        sl_inv = jnp.ones((NI, IP, 1), jnp.float32)
        sl_pow = sl_inv
        sr_inv = jnp.ones((NJ, 1, LP), jnp.float32)
        sr_pow = sr_inv

    kernel = functools.partial(_pair_kernel, num_layers=num_layers,
                               num_mlp_layers=m, scale=scale)
    out = pl.pallas_call(
        kernel,
        out_shape=jax.ShapeDtypeStruct((NI, NJ, i_blk, j_blk), jnp.float32),
        grid=(NI, NJ),
        in_specs=[
            pl.BlockSpec((None, IP, IP), lambda i, j: (i, 0, 0)),    # A_L block-diag
            pl.BlockSpec((None, IP, d), lambda i, j: (i, 0, 0)),     # X_L packed
            pl.BlockSpec((None, IP, m), lambda i, j: (i, 0, 0)),     # diag_L packed
            pl.BlockSpec((None, IP, 1), lambda i, j: (i, 0, 0)),     # 1/deg_L
            pl.BlockSpec((None, IP, 1), lambda i, j: (i, 0, 0)),     # (1/deg_L)^(L-1)
            pl.BlockSpec((None, LP, LP), lambda i, j: (j, 0, 0)),    # A_R block-diag
            pl.BlockSpec((None, LP, d), lambda i, j: (j, 0, 0)),     # X_R packed
            pl.BlockSpec((None, m, LP), lambda i, j: (j, 0, 0)),     # diag_R packed
            pl.BlockSpec((None, 1, LP), lambda i, j: (j, 0, 0)),     # 1/deg_R
            pl.BlockSpec((None, 1, LP), lambda i, j: (j, 0, 0)),     # (1/deg_R)^(L-1)
            pl.BlockSpec((i_blk, IP), lambda i, j: (0, 0)),          # left groups
            pl.BlockSpec((None, LP, j_blk), lambda i, j: (j, 0, 0)), # right groups*w
        ],
        out_specs=pl.BlockSpec((None, None, i_blk, j_blk),
                               lambda i, j: (i, j, 0, 0)),
        compiler_params=pltpu.CompilerParams(
            dimension_semantics=("parallel", "parallel")),
    )(A_Lbd, X_Lp, dcol_L, sl_inv, sl_pow,
      A_Rbd, X_Rp, D_Rp, sr_inv, sr_pow, GL, GR)

    K = jnp.transpose(out, (0, 2, 1, 3)).reshape(NL_pad, NR_pad)
    return K[:NL, :NR]


# ------------------------------ forward wrapper ------------------------------

def lite_ntk_forward(A_S, X_S, y_S, A_T, X_T, *,
                     num_layers, num_mlp_layers, scale, reg_lambda=1e-6):
    assert scale in ("uniform", "degree")
    N, n = A_S.shape[0], A_S.shape[1]
    N_T, n_p = A_T.shape[0], A_T.shape[1]

    A_S = A_S + 1e-4 * jnp.eye(n, dtype=A_S.dtype)[None]
    A_T = A_T + 1e-4 * jnp.eye(n_p, dtype=A_T.dtype)[None]

    diag_S = _diag_call(A_S, X_S, num_mlp_layers, scale)   # (N,   m, n)
    diag_T = _diag_call(A_T, X_T, num_mlp_layers, scale)   # (N_T, m, n')

    # Fused K_SS / K_ST: one pallas_call, right side = [S graphs || T graphs].
    # TODO(synk): K_SS symmetry is not exploited (would halve the SS work).
    K_full = _pair_call(A_S, X_S, diag_S,
                        [(A_S, X_S, diag_S), (A_T, X_T, diag_T)],
                        num_layers, num_mlp_layers, scale)  # (N, N + N_T)
    K_SS = K_full[:, :N]
    K_ST = K_full[:, N:N + N_T]

    # Small dense solve stays in plain JAX (no Pallas linear-solve primitive).
    KSS_reg = K_SS + reg_lambda * jnp.trace(K_SS) / N * jnp.eye(N, dtype=K_SS.dtype)
    pred = K_ST.T @ jnp.linalg.solve(KSS_reg, y_S)
    return pred, K_SS


# --------------------------- pure-JAX reference ------------------------------

def _ref_next(S):
    S = jnp.clip(S, -0.9999, 0.9999)
    DS = (_PI - jnp.arccos(S)) / _PI
    Sn = (S * (_PI - jnp.arccos(S)) + jnp.sqrt(1.0 - S * S)) / _PI
    return Sn, DS


def _ref_diag(X, A, m, scale):
    scale_mat = 1.0 if scale == "uniform" else 1.0 / jnp.outer(A.sum(1), A.sum(0))
    sigma = X @ X.T + 1e-4
    sigma = scale_mat * (A @ sigma @ A.T)
    diags = []
    for _ in range(m):
        dg = jnp.sqrt(jnp.diagonal(sigma))
        tmp = dg[:, None] * dg[None, :]
        Sn, _ = _ref_next(sigma / tmp)
        sigma = Sn * tmp
        diags.append(dg)
    return jnp.stack(diags)


def _ref_pair(A_L, X_L, dgL, A_R, X_R, dgR, num_layers, m, scale):
    if scale == "uniform":
        scale_mat = 1.0
    else:
        scale_mat = 1.0 / jnp.einsum("Na,Mb->NMab", A_L.sum(2), A_R.sum(1))
    sigma = jnp.einsum("Nad,Mbd->NMab", X_L, X_R) + 1e-4
    sigma = jnp.einsum("Nab,NMbc,Mdc->NMad", A_L, sigma, A_R)
    sigma = scale_mat * sigma
    ntk = sigma
    for l in range(m):
        tmp = jnp.einsum("Na,Mb->NMab", dgL[:, l, :], dgR[:, l, :]) + 1e-6
        Sn, DS = _ref_next(sigma / tmp)
        ntk = ntk * DS + Sn
        sigma = Sn * tmp
    for _ in range(1, num_layers):
        ntk = jnp.einsum("Nab,NMbc,Mdc->NMad", A_L, ntk, A_R)
    ntk = (scale_mat ** (num_layers - 1)) * ntk
    return ntk.mean(axis=(2, 3))


def _ref_forward(A_S, X_S, y_S, A_T, X_T, *,
                 num_layers, num_mlp_layers, scale, reg_lambda):
    with jax.default_matmul_precision("highest"):
        N, n = A_S.shape[0], A_S.shape[1]
        N_T, n_p = A_T.shape[0], A_T.shape[1]
        A_S = A_S + 1e-4 * jnp.eye(n)[None]
        A_T = A_T + 1e-4 * jnp.eye(n_p)[None]
        dS = jnp.stack([_ref_diag(X_S[i], A_S[i], num_mlp_layers, scale)
                        for i in range(N)])
        dT = jnp.stack([_ref_diag(X_T[i], A_T[i], num_mlp_layers, scale)
                        for i in range(N_T)])
        K_SS = _ref_pair(A_S, X_S, dS, A_S, X_S, dS, num_layers, num_mlp_layers, scale)
        K_ST = _ref_pair(A_S, X_S, dS, A_T, X_T, dT, num_layers, num_mlp_layers, scale)
        KSS_reg = K_SS + reg_lambda * jnp.trace(K_SS) / N * jnp.eye(N)
        pred = K_ST.T @ jnp.linalg.solve(KSS_reg, y_S)
        return pred, K_SS


# ----------------------------------- main -------------------------------------

if __name__ == "__main__":
    # LiteNTK hyperparameters (the module has no learned weights).
    num_layers, num_mlp_layers, scale, reg_lambda = 3, 2, "degree", 1e-6

    N_S, N_T, n, n_p, d, c = 3, 2, 8, 8, 16, 3
    key = jax.random.PRNGKey(0)
    ks = jax.random.split(key, 5)

    def make_adj(k, G, nn):
        u = jax.random.uniform(k, (G, nn, nn))
        a = (u > 0.6).astype(jnp.float32)
        a = jnp.maximum(a, jnp.transpose(a, (0, 2, 1)))      # symmetric
        a = jnp.minimum(a + jnp.eye(nn, dtype=jnp.float32)[None], 1.0)  # self loops
        return a

    A_S = make_adj(ks[0], N_S, n)
    A_T = make_adj(ks[1], N_T, n_p)
    X_S = jax.random.normal(ks[2], (N_S, n, d), dtype=jnp.float32)
    X_T = jax.random.normal(ks[3], (N_T, n_p, d), dtype=jnp.float32)
    y_S = jax.random.normal(ks[4], (N_S, c), dtype=jnp.float32)

    pred, K_SS = lite_ntk_forward(
        A_S, X_S, y_S, A_T, X_T,
        num_layers=num_layers, num_mlp_layers=num_mlp_layers,
        scale=scale, reg_lambda=reg_lambda)
    pred = jax.block_until_ready(pred)
    K_SS = jax.block_until_ready(K_SS)

    # Sanity check against a pure-JAX (non-Pallas) reference.
    ref_pred, ref_KSS = _ref_forward(
        A_S, X_S, y_S, A_T, X_T,
        num_layers=num_layers, num_mlp_layers=num_mlp_layers,
        scale=scale, reg_lambda=reg_lambda)

    def relerr(a, b):
        return float(jnp.linalg.norm(a - b) / jnp.maximum(jnp.linalg.norm(b), 1e-6))

    assert bool(jnp.all(jnp.isfinite(pred))) and bool(jnp.all(jnp.isfinite(K_SS)))
    assert relerr(K_SS, ref_KSS) < 5e-2, relerr(K_SS, ref_KSS)
    assert relerr(pred, ref_pred) < 5e-2, relerr(pred, ref_pred)

    print("KERNEL_OK")
</pallas_src>

<mosaic_0001>
module attributes {stable_mosaic.version = 11 : i64} {
  func.func @_diag_kernel(%arg0: i32, %arg1: memref<1x8x8xf32, #tpu.memory_space<vmem>>, %arg2: memref<1x8x16xf32, #tpu.memory_space<vmem>>, %arg3: memref<1x8x1xf32, #tpu.memory_space<vmem>>, %arg4: memref<1x1x8xf32, #tpu.memory_space<vmem>>, %arg5: memref<1x2x8xf32, #tpu.memory_space<vmem>>) attributes {dimension_semantics = [#tpu.dimension_semantics<parallel>], iteration_bounds = array<i64: 3>, scalar_prefetch = 0 : i64, scratch_operands = 0 : i64, tpu.core_type = #tpu.core_type<tc>, window_params = [{transform_indices = @transform_0, window_bounds = array<i64: 1, 8, 8>}, {transform_indices = @transform_1, window_bounds = array<i64: 1, 8, 16>}, {transform_indices = @transform_2, window_bounds = array<i64: 1, 8, 1>}, {transform_indices = @transform_3, window_bounds = array<i64: 1, 1, 8>}, {transform_indices = @transform_4, window_bounds = array<i64: 1, 2, 8>}]} {
    %c0 = arith.constant 0 : index
    %c0_0 = arith.constant 0 : index
    %c0_1 = arith.constant 0 : index
    %0 = vector.load %arg1[%c0, %c0_0, %c0_1] : memref<1x8x8xf32, #tpu.memory_space<vmem>>, vector<1x8x8xf32>
    %1 = vector.shape_cast %0 : vector<1x8x8xf32> to vector<8x8xf32>
    %c0_2 = arith.constant 0 : index
    %c0_3 = arith.constant 0 : index
    %c0_4 = arith.constant 0 : index
    %2 = vector.load %arg2[%c0_2, %c0_3, %c0_4] : memref<1x8x16xf32, #tpu.memory_space<vmem>>, vector<1x8x16xf32>
    %3 = vector.shape_cast %2 : vector<1x8x16xf32> to vector<8x16xf32>
    %cst = arith.constant dense<0.000000e+00> : vector<8x8xf32>
    %4 = tpu.matmul %3, %3, %cst {dimension_numbers = #tpu.dot_dimension_numbers<[1], [1], [0], [0], [0, 0, 1, 0], [], []>} : vector<8x16xf32>, vector<8x16xf32>, vector<8x8xf32> -> vector<8x8xf32>
    %cst_5 = arith.constant 9.99999974E-5 : f32
    %5 = vector.broadcast %cst_5 : f32 to vector<8x8xf32>
    %6 = arith.addf %4, %5 : vector<8x8xf32>
    %cst_6 = arith.constant dense<0.000000e+00> : vector<8x8xf32>
    %7 = tpu.matmul %1, %6, %cst_6 {dimension_numbers = #tpu.dot_dimension_numbers<[1], [0], [0], [1], [0, 0, 1, 1], [], []>} : vector<8x8xf32>, vector<8x8xf32>, vector<8x8xf32> -> vector<8x8xf32>
    %cst_7 = arith.constant dense<0.000000e+00> : vector<8x8xf32>
    %8 = tpu.matmul %7, %1, %cst_7 {dimension_numbers = #tpu.dot_dimension_numbers<[1], [1], [0], [0], [0, 0, 1, 0], [], []>} : vector<8x8xf32>, vector<8x8xf32>, vector<8x8xf32> -> vector<8x8xf32>
    %c0_8 = arith.constant 0 : index
    %c0_9 = arith.constant 0 : index
    %c0_10 = arith.constant 0 : index
    %9 = vector.load %arg3[%c0_8, %c0_9, %c0_10] : memref<1x8x1xf32, #tpu.memory_space<vmem>>, vector<1x8x1xf32>
    %10 = vector.shape_cast %9 : vector<1x8x1xf32> to vector<8x1xf32>
    %c0_11 = arith.constant 0 : index
    %c0_12 = arith.constant 0 : index
    %c0_13 = arith.constant 0 : index
    %11 = vector.load %arg4[%c0_11, %c0_12, %c0_13] : memref<1x1x8xf32, #tpu.memory_space<vmem>>, vector<1x1x8xf32>
    %12 = vector.shape_cast %11 : vector<1x1x8xf32> to vector<1x8xf32>
    %13 = vector.broadcast %10 : vector<8x1xf32> to vector<8x8xf32>
    %14 = vector.broadcast %12 : vector<1x8xf32> to vector<8x8xf32>
    %15 = arith.mulf %13, %14 : vector<8x8xf32>
    %16 = arith.mulf %8, %15 : vector<8x8xf32>
    %17 = tpu.iota {dimensions = array<i32: 0>} : vector<8x8xi32>
    %18 = tpu.iota {dimensions = array<i32: 1>} : vector<8x8xi32>
    %19 = arith.cmpi eq, %17, %18 : vector<8x8xi32>
    %20 = arith.extui %19 : vector<8x8xi1> to vector<8x8xi32>
    %21 = arith.sitofp %20 : vector<8x8xi32> to vector<8x8xf32>
    %22 = arith.mulf %16, %21 : vector<8x8xf32>
    %cst_14 = arith.constant dense<0.000000e+00> : vector<8xf32>
    %23 = vector.multi_reduction <add>, %22, %cst_14 [0] : vector<8x8xf32> to vector<8xf32>
    %24 = vector.shape_cast %23 : vector<8xf32> to vector<1x8xf32>
    %cst_15 = arith.constant dense<0.000000e+00> : vector<8xf32>
    %25 = vector.multi_reduction <add>, %22, %cst_15 [1] : vector<8x8xf32> to vector<8xf32>
    %26 = vector.shape_cast %25 : vector<8xf32> to vector<8x1xf32>
    %27 = math.sqrt %24 : vector<1x8xf32>
    %c0_16 = arith.constant 0 : index
    %c0_17 = arith.constant 0 : index
    %c0_18 = arith.constant 0 : index
    %28 = vector.load %arg5[%c0_16, %c0_17, %c0_18] : memref<1x2x8xf32, #tpu.memory_space<vmem>>, vector<1x1x8xf32>
    %29 = vector.shape_cast %28 : vector<1x1x8xf32> to vector<1x8xf32>
    %30 = vector.shape_cast %27 : vector<1x8xf32> to vector<1x1x8xf32>
    tpu.vector_store %arg5[%c0_16, %c0_17, %c0_18], %30 {strides = array<i32>} : memref<1x2x8xf32, #tpu.memory_space<vmem>>, vector<1x1x8xf32>,
    %31 = math.sqrt %26 : vector<8x1xf32>
    %32 = vector.broadcast %31 : vector<8x1xf32> to vector<8x8xf32>
    %33 = vector.broadcast %27 : vector<1x8xf32> to vector<8x8xf32>
    %34 = arith.mulf %32, %33 : vector<8x8xf32>
    %35 = arith.divf %16, %34 : vector<8x8xf32>
    %cst_19 = arith.constant -0.999899983 : f32
    %cst_20 = arith.constant 0.999899983 : f32
    %36 = vector.broadcast %cst_19 : f32 to vector<8x8xf32>
    %37 = arith.maximumf %36, %35 : vector<8x8xf32>
    %38 = vector.broadcast %cst_20 : f32 to vector<8x8xf32>
    %39 = arith.minimumf %38, %37 : vector<8x8xf32>
    %40 = math.absf %39 : vector<8x8xf32>
    %cst_21 = arith.constant -0.0012624911 : f32
    %41 = vector.broadcast %cst_21 : f32 to vector<8x8xf32>
    %42 = arith.mulf %41, %40 : vector<8x8xf32>
    %cst_22 = arith.constant 6.670090e-03 : f32
    %43 = vector.broadcast %cst_22 : f32 to vector<8x8xf32>
    %44 = arith.addf %42, %43 : vector<8x8xf32>
    %45 = arith.mulf %44, %40 : vector<8x8xf32>
    %cst_23 = arith.constant -0.0170881264 : f32
    %46 = vector.broadcast %cst_23 : f32 to vector<8x8xf32>
    %47 = arith.addf %45, %46 : vector<8x8xf32>
    %48 = arith.mulf %47, %40 : vector<8x8xf32>
    %cst_24 = arith.constant 0.0308918804 : f32
    %49 = vector.broadcast %cst_24 : f32 to vector<8x8xf32>
    %50 = arith.addf %48, %49 : vector<8x8xf32>
    %51 = arith.mulf %50, %40 : vector<8x8xf32>
    %cst_25 = arith.constant -0.0501743034 : f32
    %52 = vector.broadcast %cst_25 : f32 to vector<8x8xf32>
    %53 = arith.addf %51, %52 : vector<8x8xf32>
    %54 = arith.mulf %53, %40 : vector<8x8xf32>
    %cst_26 = arith.constant 0.0889789909 : f32
    %55 = vector.broadcast %cst_26 : f32 to vector<8x8xf32>
    %56 = arith.addf %54, %55 : vector<8x8xf32>
    %57 = arith.mulf %56, %40 : vector<8x8xf32>
    %cst_27 = arith.constant -0.214598805 : f32
    %58 = vector.broadcast %cst_27 : f32 to vector<8x8xf32>
    %59 = arith.addf %57, %58 : vector<8x8xf32>
    %60 = arith.mulf %59, %40 : vector<8x8xf32>
    %cst_28 = arith.constant 1.57079625 : f32
    %61 = vector.broadcast %cst_28 : f32 to vector<8x8xf32>
    %62 = arith.addf %60, %61 : vector<8x8xf32>
    %cst_29 = arith.constant 1.000000e+00 : f32
    %63 = vector.broadcast %cst_29 : f32 to vector<8x8xf32>
    %64 = arith.subf %63, %40 : vector<8x8xf32>
    %cst_30 = arith.constant 0.000000e+00 : f32
    %65 = vector.broadcast %cst_30 : f32 to vector<8x8xf32>
    %66 = arith.maximumf %64, %65 : vector<8x8xf32>
    %67 = math.sqrt %66 : vector<8x8xf32>
    %68 = arith.mulf %67, %62 : vector<8x8xf32>
    %cst_31 = arith.constant 0.000000e+00 : f32
    %69 = vector.broadcast %cst_31 : f32 to vector<8x8xf32>
    %70 = arith.cmpf olt, %39, %69 : vector<8x8xf32>
    %cst_32 = arith.constant 3.14159274 : f32
    %71 = vector.broadcast %cst_32 : f32 to vector<8x8xf32>
    %72 = arith.subf %71, %68 : vector<8x8xf32>
    %73 = arith.select %70, %72, %68 : vector<8x8xi1>, vector<8x8xf32>
    %cst_33 = arith.constant 3.14159274 : f32
    %74 = vector.broadcast %cst_33 : f32 to vector<8x8xf32>
    %75 = arith.subf %74, %73 : vector<8x8xf32>
    %76 = arith.mulf %39, %75 : vector<8x8xf32>
    %77 = arith.mulf %39, %39 : vector<8x8xf32>
    %cst_34 = arith.constant 1.000000e+00 : f32
    %78 = vector.broadcast %cst_34 : f32 to vector<8x8xf32>
    %79 = arith.subf %78, %77 : vector<8x8xf32>
    %80 = math.sqrt %79 : vector<8x8xf32>
    %81 = arith.addf %76, %80 : vector<8x8xf32>
    %cst_35 = arith.constant 3.14159274 : f32
    %82 = vector.broadcast %cst_35 : f32 to vector<8x8xf32>
    %83 = arith.divf %81, %82 : vector<8x8xf32>
    %84 = arith.mulf %83, %34 : vector<8x8xf32>
    %85 = arith.mulf %84, %21 : vector<8x8xf32>
    %cst_36 = arith.constant dense<0.000000e+00> : vector<8xf32>
    %86 = vector.multi_reduction <add>, %85, %cst_36 [0] : vector<8x8xf32> to vector<8xf32>
    %87 = vector.shape_cast %86 : vector<8xf32> to vector<1x8xf32>
    %88 = math.sqrt %87 : vector<1x8xf32>
    %c0_37 = arith.constant 0 : index
    %c1 = arith.constant 1 : index
    %c0_38 = arith.constant 0 : index
    %89 = vector.load %arg5[%c0_37, %c1, %c0_38] : memref<1x2x8xf32, #tpu.memory_space<vmem>>, vector<1x1x8xf32>
    %90 = vector.shape_cast %89 : vector<1x1x8xf32> to vector<1x8xf32>
    %91 = vector.shape_cast %88 : vector<1x8xf32> to vector<1x1x8xf32>
    tpu.vector_store %arg5[%c0_37, %c1, %c0_38], %91 {strides = array<i32>} : memref<1x2x8xf32, #tpu.memory_space<vmem>>, vector<1x1x8xf32>,
    return
  }
  func.func @transform_0(%arg0: i32) -> (i32, i32, i32) {
    %c0_i32 = arith.constant 0 : i32
    %c0_i32_0 = arith.constant 0 : i32
    %c0_i32_1 = arith.constant 0 : i32
    return %arg0, %c0_i32, %c0_i32_0 : i32, i32, i32
  }
  func.func @transform_1(%arg0: i32) -> (i32, i32, i32) {
    %c0_i32 = arith.constant 0 : i32
    %c0_i32_0 = arith.constant 0 : i32
    %c0_i32_1 = arith.constant 0 : i32
    return %arg0, %c0_i32, %c0_i32_0 : i32, i32, i32
  }
  func.func @transform_2(%arg0: i32) -> (i32, i32, i32) {
    %c0_i32 = arith.constant 0 : i32
    %c0_i32_0 = arith.constant 0 : i32
    %c0_i32_1 = arith.constant 0 : i32
    return %arg0, %c0_i32, %c0_i32_0 : i32, i32, i32
  }
  func.func @transform_3(%arg0: i32) -> (i32, i32, i32) {
    %c0_i32 = arith.constant 0 : i32
    %c0_i32_0 = arith.constant 0 : i32
    %c0_i32_1 = arith.constant 0 : i32
    return %arg0, %c0_i32, %c0_i32_0 : i32, i32, i32
  }
  func.func @transform_4(%arg0: i32) -> (i32, i32, i32) {
    %c0_i32 = arith.constant 0 : i32
    %c0_i32_0 = arith.constant 0 : i32
    %c0_i32_1 = arith.constant 0 : i32
    return %arg0, %c0_i32, %c0_i32_0 : i32, i32, i32
  }
}

</mosaic_0001>

<bundles_post_ra>
// kernel: tpu_custom_call.1
= control target key start
LH: loop header
LB: loop body
LE: loop exit
PB: predicated region body
PF: predicated region fallthrough
CT: control target
= control target key end

     0   :  { %9 = vsyncpa [#allocation3], 0  ;;  %s1118_s0 = inlined_call_operand.vmem [shape: f32[3,8,8], index: 0, kind: input, shape index: {}]   ;;  %s1119_s1 = inlined_call_operand.hbm [shape: f32[3,8,16], index: 1, kind: input, shape index: {}]   ;;  %s1120_s2 = inlined_call_operand.vmem [shape: f32[3,8,1], index: 2, kind: input, shape index: {}]   ;;  %s1121_s3 = inlined_call_operand.vmem [shape: f32[3,1,8], index: 3, kind: input, shape index: {}]   ;;  %s1122_s4 = inlined_call_operand.hbm [shape: f32[3,2,8], index: 4, kind: output, shape index: {}]  }
   0x1   :  { %11 = vsyncpa [#allocation3 + $0x1], 0 }
   0x2   :  { %12 = vsyncpa [#allocation4], 0 }
   0x3   :  { %14 = vsyncpa [#allocation4 + $0x1], 0  ;;  %s942_s15 = smov 0   ;;  %s944_s16 = smov 0  }
   0x4   :  { %s946_s17 = smov 0   ;;  %s948_s18 = smov 0  }
   0x5 LB: > { %s963_s19 = sadd.s32 4294967295, %s910_s18   ;;  %s713_s20 = sadd.s32 4294967294, %s910_s18   ;;  %s910_s18 = sphi %s948_s18, %s1138_s18   ;;  %s906_s17 = sphi %s946_s17, %s1137_s17   ;;  %s902_s16 = sphi %s944_s16, %s1136_s16   ;;  %s898_s15 = sphi %s942_s15, %s1135_s15  }
   0x6   : > { %s967_s21 = sadd.s32 1, %s910_s18   ;;  %s53_s22 = sadd.s32 1, %s906_s17 }
   0x7   : > { %s50_s23 = ssub.s32 %s910_s18, %s967_s21  ;;  %p60_p0 = scmp.ne.s32.totalorder %s906_s17, %s902_s16 }
   0x8   : > { %p51_p1 = scmp.eq.s32.totalorder %s50_s23, 0  ;;  %p61_p2 = scmp.eq.s32.totalorder %s910_s18, 0 }
   0x9   : > { %p66_p3 = scmp.ne.s32.totalorder %s902_s16, %s898_s15  ;;  %p67_p4 = scmp.eq.s32.totalorder %s963_s19, 0 }
   0xa   : > { %s979_s24 = scalar_select %p51_p1, %s906_s17, %s53_s22  }
   0xb   : > { %p981_p5 = por %p61_p2, %p60_p0  ;;  %p985_p6 = por %p67_p4, %p66_p3 }
   0xc   : > { %p142_p7 = scmp.eq.s32.totalorder %s963_s19, 2  ;;  %p148_p8 = scmp.eq.s32.totalorder %s713_s20, 2 }
   0xd   : > { %s1126_s26 = scalar_select %p985_p6, 1, 0 }
   0xe   : > { %p768_p9 = scmp.lt.s32.totalorder %s910_s18, 3  ;;  %p991_p10 = por %p142_p7, %p60_p0 }
   0xf   : > { %p995_p11 = por %p148_p8, %p66_p3  ;;  %s175_s29 = sand.u32 1, %s906_s17  }
  0x10   : > { %s1127_s27 = scalar_select %p991_p10, 1, 0 }
  0x11   : > { %s1128_s28 = scalar_select %p995_p11, 1, 0 }
  0x12   : > { %s717_s30 = sshll.u32 %s910_s18, 7  ;;  %s716_s5 = sshll.u32 %s175_s29, 3 }
  0x13   : > { %s1004_s8 = scalar_lea.hbm %s1119_s1, %s717_s30  ;;  %s179_s9 = scalar_lea.vmem [#allocation2], %s716_s5 }
  0x14   : > { %s186_s10 = sshll.u32 %s179_s9, 4  ;;  %p1008_p12 = pnand %p768_p9, %p981_p5  ;;  %s1012_s10 = int_to_ptr.vmem [resolvable:$true] %s186_s10 }
  0x15   : > { %s176_s12 = scalar_lea.sflag [#allocation3], %s175_s29  ;;  %s818_s13 = scalar_lea.hbm %s1004_s8, 128 }
  0x16   : > { %p819_p1 = scmp.ne.s32.totalorder %s1004_s8, %s818_s13  ;;  %p820_p2 = pneg %p1008_p12 }
  0x17   : > { %s823_s22 = scalar_lea.hbm %s1119_s1, 384  ;;  %p824_p5 = scmp.lt.s32.totalorder %s1004_s8, %s1119_s1 }
  0x18   : > { %p821_p3 = pnand %p820_p2, %p819_p1  ;;  %p825_p7 = scmp.lt.s32.totalorder %s823_s22, %s818_s13 }
  0x1a   : > { %p822_p4 = pneg %p821_p3  ;;  %p826_p8 = por %p825_p7, %p824_p5 }
  0x1c   : > { %p827_p9 = pnand %p826_p8, %p822_p4 }
  0x1e   : > { %830 = shalt.err (!%p827_p9)
}
  0x1f   : > { %s831_s29 = scalar_lea.vmem %s1012_s10, 128  ;;  %s912_s30 = smov [#allocation2]  }
  0x20   : > { %p832_p13 = scmp.ne.s32.totalorder %s1012_s10, %s831_s29  ;;  %s836_s5 = sshll.u32 %s912_s30, 4  ;;  %s837_s5 = int_to_ptr.vmem [resolvable:$false] %s836_s5 }
  0x21   : > { %s838_s6 = scalar_lea.vmem %s837_s5, 256  ;;  %p839_p3 = scmp.lt.s32.totalorder %s1012_s10, %s837_s5 }
  0x22   : > { %p834_p0 = pnand %p832_p13, %p820_p2  ;;  %p840_p11 = scmp.lt.s32.totalorder %s838_s6, %s831_s29 }
  0x24   : > { %p835_p1 = pneg %p834_p0  ;;  %p841_p10 = por %p840_p11, %p839_p3 }
  0x26   : > { %p842_p6 = pnand %p841_p10, %p835_p1 }
  0x28   : > { %845 = shalt.err (!%p842_p6)
}
  0x29   : > { %763 = dma.hbm_to_vmem [thread:$0]  (!%p1008_p12), %s1004_s8, 128, %s1012_s10, %s176_s12  }
  0x2a   : > { %p1130_p4 = scmp.lt.s32.totalorder %s910_s18, 4  ;;  %p1131_p5 = scmp.ge.s32.totalorder %s910_s18, 1 }
  0x2c   : > { %p205_p13 = pnand %p1131_p5, %p1130_p4 }
  0x2d   : > { %s1039_s7 = sand.u32 (!%p205_p13), 1, %s902_s16   ;;  %p1132_p6 = scmp.ne.s32.totalorder (!%p205_p13), %s1126_s26, 0 }
  0x2e   : > { %208 = sbr.rel (%p205_p13) target bundleno = 912 (0x390), region = 36  ;;  %s719_s9 = sshll.u32 (!%p205_p13), %s1039_s7, 3 }
  0x2f   : > { %s211_s13 = scalar_lea.sflag (!%p205_p13), [#allocation3], %s1039_s7  ;;  %s214_s14 = scalar_lea.vmem (!%p205_p13), [#allocation2], %s719_s9 }
  0x33   : > { %889 = dma.done.wait (%p1132_p6), %s211_s13, 128  }
  0x34   : > { %891 = vsyncadd (%p1132_p6), %s211_s13, 4294967168  ;;  %v913_v0 = vmov 0.0   ;;  %vm914_vm0 = vmmov 0   ;;  %vm263_vm1 = vcmask 130048   ;;  %v262_v1 = vld [vmem:[%s214_s14] sm:$0xff]  ;;  %p250_p10 = scmp.lt.s32.totalorder %s963_s19, 2  ;;  %v499_v10 = vlaneseq }
  0x35   : > { %741 = vmatprep.subr.mxu0 %v913_v0  ;;  %743 = vmatprep.mubr.msk.f32.mxu0 %vm914_vm0, %v913_v0  ;;  %vm337_vm2 = vcmask 64512   ;;  %v915_v6 = vmov 0   ;;  %s720_s5 = sshll.u32 %s1039_s7, 1  ;;  %vm523_vm5 = vcmask 57344   ;;  %s732_s9 = sshll.u32 %s963_s19, 5 }
  0x36   : > { %746 = vmatprep.subr.mxu1 %v913_v0  ;;  %748 = vmatprep.mubr.msk.f32.mxu1 %vm914_vm0, %v913_v0  ;;  %s251_s8 = scalar_select %p250_p10, %s963_s19, 2  ;;  %v500_v11 = vshrl.u32 %v499_v10, 7  ;;  %v502_v12 = vand.u32 127, %v499_v10 }
  0x37   : > { %742 = vmatpush3.xpose.msk.msra.mxu0 %vm263_vm1, %v262_v1  ;;  %805 = vset.pattern.permute.xlu0 %v915_v6  ;;  %s1069_s6 = scalar_lea.vmem [#allocation5], %s720_s5  ;;  %s597_s11 = scalar_lea.sflag [#allocation4], %s1039_s7 }
  0x38   : > { %s721_s10 = sshll.u32 %s251_s8, 3  ;;  %s260_s30 = scalar_lea.vmem %s1121_s3, %s251_s8  ;;  %vm503_vm3 = vcmp.eq.s32.totalorder %v500_v11, %v502_v12 }
  0x39   : > { %s253_s12 = scalar_lea.vmem %s1118_s0, %s721_s10  ;;  %s257_s23 = scalar_lea.vmem %s1120_s2, %s721_s10  ;;  %v728_v13 = vld [vmem:[%s260_s30] ss:$0 sm:$0xff]  ;;  %v1064_v17 = vsel %vm503_vm3, 1.0, %v913_v0 }
  0x3a   : > { %744 = vmatmul.mubr.msk.f32.vlgmr.msra.gmra.mxu0 %vm263_vm1, %v262_v1  ;;  %v261_v4 = vld [vmem:[%s253_s12] sm:$0xff]  ;;  %s610_s13 = sshll.u32 %s1069_s6, 4  ;;  %s1080_s10 = scalar_lea.hbm %s1122_s4, %s732_s9  ;;  %s611_s13 = int_to_ptr.vmem [resolvable:$true] %s610_s13 }
  0x3b   : > { %v484_v7 = vld [vmem:[%s257_s23] sm:$0xff]  ;;  %s846_s26 = scalar_lea.vmem %s611_s13, 32  ;;  %p1133_p12 = scmp.ne.s32.totalorder %s1127_s27, 0 }
  0x3c   : > { %488 = vperm.xlu0 %805, %v484_v7   ;;  %p847_p11 = scmp.ne.s32.totalorder %s611_s13, %s846_s26  ;;  %s916_s19 = smov [#allocation5]  }
  0x3d   : > { %s850_s12 = sshll.u32 %s916_s19, 4  ;;  %s851_s12 = int_to_ptr.vmem [resolvable:$false] %s850_s12 }
  0x3e   : > { %p848_p0 = pnand %p847_p11, %p1133_p12  ;;  %s852_s20 = scalar_lea.vmem %s851_s12, 64 }
  0x3f   : > { %p853_p7 = scmp.lt.s32.totalorder %s611_s13, %s851_s12  ;;  %p854_p8 = scmp.lt.s32.totalorder %s852_s20, %s846_s26 }
  0x40   : > { %p849_p2 = pneg %p848_p0 }
  0x41   : > { %p855_p9 = por %p854_p8, %p853_p7 }
  0x43   : > { %p856_p1 = pnand %p855_p9, %p849_p2 }
  0xb7   : > { %v489_v14 = vpop.permute.xlu0 %488 }
  0xb8   : > { %v497_v15 = vmul.f32 %v728_v13, %v489_v14 }
  0xfa   : > { %v333_v2 = vpop.f32.mrf.mxu0 }
  0xfb   : > { %v334_v3 = vadd.f32 0.0001, %v333_v2 }
  0xfc   : > { %v745_v5 = vpop.f32.mrf.mxu0 }
  0xfd   : > { %747 = vmatpush3.msra.mxu1 %v334_v3 }
  0xfe   : > { %749 = vmatmul.mubr.msk.f32.vlgmr.msra.gmra.mxu1 %vm337_vm2, %v261_v4  ;;  %751 = vmatprep.subr.mxu1 %v913_v0 }
  0xff   : > { %752 = vmatpush3.xpose.msk.msra.mxu1 %vm337_vm2, %v261_v4  ;;  %753 = vmatprep.mubr.msk.f32.mxu1 %vm914_vm0, %v913_v0 }
 0x1be   : > { %v407_v8 = vpop.f32.mrf.mxu1 }
 0x1bf   : > { %754 = vmatmul.mubr.msk.f32.vlgmr.msra.gmra.mxu1 %vm337_vm2, %v407_v8 }
 0x1c0   : > { %v750_v9 = vpop.f32.mrf.mxu1 }
 0x27f   : > { %v480_v16 = vpop.f32.mrf.mxu1 }
 0x280   : > { %v498_v18 = vmul.f32 %v497_v15, %v480_v16 }
 0x281   : > { %v755_v19 = vpop.f32.mrf.mxu1 }
 0x282   : > { %v506_v20 = vmul.f32 %v1064_v17, %v498_v18 }
 0x284   : > { %v507_v21 = vsel %vm337_vm2, %v506_v20, 0.0 }
 0x285   : > { %514 = vadd.xlane.f32.xlu0 %v507_v21  ;;  %v508_v22 = vrot.slane %v507_v21, 4 }
 0x287   : > { %v509_v23 = vadd.f32 %v508_v22, %v507_v21 }
 0x289   : > { %v510_v24 = vrot.slane %v509_v23, 2 }
 0x28b   : > { %v511_v25 = vadd.f32 %v510_v24, %v509_v23 }
 0x28d   : > { %v512_v26 = vrot.slane %v511_v25, 1 }
 0x28f   : > { %v513_v27 = vadd.f32 %v512_v26, %v511_v25 }
 0x291   : > { %806 = vrsqrt.f32 %v513_v27  ;;  %vm518_vm4 = vcmp.eq.f32.partialorder %v513_v27, inf  ;;  %v521_v30 = vand.u32 2147483648, %v513_v27  ;;  %vm520_vm6 = vcmp.eq.f32.partialorder %v513_v27, 0.0 }
 0x29e   : > { %v807_v28 = vpop.eup %806 }
 0x29f   : > { %v517_v29 = vmul.f32 %v807_v28, %v513_v27 }
 0x2a1   : > { %v519_v31 = vsel %vm518_vm4, %v513_v27, %v517_v29 }
 0x2a2   : > { %v522_v32 = vsel %vm520_vm6, %v521_v30, %v519_v31 }
 0x2a3   : > { %524 = vst.msk [vmem:[%s1069_s6] sm:$0x1] %vm523_vm5, %v522_v32 }
 0x30e   : > { %v515_v33 = vpop.xlane.xlu0 %514 }
 0x30f   : > { %808 = vrsqrt.f32 %v515_v33  ;;  %vm527_vm7 = vcmp.eq.f32.partialorder %v515_v33, inf  ;;  %v530_v36 = vand.u32 2147483648, %v515_v33  ;;  %vm529_vm8 = vcmp.eq.f32.partialorder %v515_v33, 0.0 }
 0x31c   : > { %v809_v34 = vpop.eup %808 }
 0x31d   : > { %v526_v35 = vmul.f32 %v809_v34, %v515_v33 }
 0x31f   : > { %v528_v37 = vsel %vm527_vm7, %v515_v33, %v526_v35 }
 0x320   : > { %v531_v38 = vsel %vm529_vm8, %v530_v36, %v528_v37 }
 0x321   : > { %v532_v39 = vmul.f32 %v531_v38, %v522_v32 }
 0x323   : > { %810 = vrcp.f32 %v532_v39 }
 0x330   : > { %v811_v40 = vpop.eup %810 }
 0x331   : > { %v534_v41 = vmul.f32 %v811_v40, %v498_v18 }
 0x333   : > { %v730_v42 = vclamps-f32 %v534_v41, 0.9999 }
 0x335   : > { %v537_v43 = vand.u32 2147483647, %v730_v42  ;;  %v567_v49 = vmul.f32 %v730_v42, %v730_v42  ;;  %vm562_vm11 = vcmp.lt.f32.partialorder %v730_v42, 0.0 }
 0x337   : > { %v538_v44 = vmul.f32 -0.0012624911, %v537_v43  ;;  %v552_v45 = vsub.f32 1.0, %v537_v43  ;;  %v568_v52 = vsub.f32 1.0, %v567_v49 }
 0x339   : > { %v539_v46 = vadd.f32 0.00667009, %v538_v44  ;;  %v553_v47 = vmax.f32 %v552_v45, 0.0  ;;  %vm571_vm12 = vcmp.eq.f32.partialorder %v568_v52, inf  ;;  %v574_v10 = vand.u32 2147483648, %v568_v52 }
 0x33a   : > { %vm573_vm13 = vcmp.eq.f32.partialorder %v568_v52, 0.0 }
 0x33b   : > { %v540_v48 = vmul.f32 %v539_v46, %v537_v43  ;;  %812 = vrsqrt.f32 %v553_v47  ;;  %vm556_vm9 = vcmp.eq.f32.partialorder %v553_v47, inf  ;;  %v559_v0 = vand.u32 2147483648, %v553_v47 }
 0x33c   : > { %814 = vrsqrt.f32 %v568_v52  ;;  %vm558_vm10 = vcmp.eq.f32.partialorder %v553_v47, 0.0 }
 0x33d   : > { %v541_v50 = vadd.f32 -0.017088126, %v540_v48 }
 0x33f   : > { %v542_v51 = vmul.f32 %v541_v50, %v537_v43 }
 0x341   : > { %v543_v53 = vadd.f32 0.03089188, %v542_v51 }
 0x343   : > { %v544_v54 = vmul.f32 %v543_v53, %v537_v43 }
 0x345   : > { %v545_v55 = vadd.f32 -0.050174303, %v544_v54 }
 0x347   : > { %v546_v56 = vmul.f32 %v545_v55, %v537_v43 }
 0x348   : > { %v813_v57 = vpop.eup %812 }
 0x349   : > { %v547_v58 = vadd.f32 0.08897899, %v546_v56  ;;  %v555_v60 = vmul.f32 %v813_v57, %v553_v47  ;;  %v815_v1 = vpop.eup %814 }
 0x34a   : > { %v570_v5 = vmul.f32 %v815_v1, %v568_v52 }
 0x34b   : > { %v548_v59 = vmul.f32 %v547_v58, %v537_v43  ;;  %v557_v63 = vsel %vm556_vm9, %v553_v47, %v555_v60 }
 0x34c   : > { %v560_v3 = vsel %vm558_vm10, %v559_v0, %v557_v63  ;;  %v572_v9 = vsel %vm571_vm12, %v568_v52, %v570_v5 }
 0x34d   : > { %v549_v61 = vadd.f32 -0.2145988, %v548_v59  ;;  %v575_v12 = vsel %vm573_vm13, %v574_v10, %v572_v9 }
 0x34f   : > { %v550_v62 = vmul.f32 %v549_v61, %v537_v43 }
 0x351   : > { %v551_v2 = vadd.f32 1.5707963, %v550_v62 }
 0x353   : > { %v561_v4 = vmul.f32 %v560_v3, %v551_v2 }
 0x355   : > { %v563_v6 = vsub.f32 3.1415927, %v561_v4 }
 0x357   : > { %v564_v7 = vsel %vm562_vm11, %v563_v6, %v561_v4 }
 0x358   : > { %v565_v8 = vsub.f32 3.1415927, %v564_v7 }
 0x35a   : > { %v566_v11 = vmul.f32 %v730_v42, %v565_v8 }
 0x35c   : > { %v576_v13 = vadd.f32 %v575_v12, %v566_v11 }
 0x35e   : > { %v578_v14 = vmul.f32 0.31830987, %v576_v13 }
 0x360   : > { %v579_v15 = vmul.f32 %v578_v14, %v532_v39 }
 0x362   : > { %v580_v16 = vmul.f32 %v1064_v17, %v579_v15 }
 0x364   : > { %v581_v18 = vsel %vm337_vm2, %v580_v16, 0.0 }
 0x365   : > { %v582_v19 = vrot.slane %v581_v18, 4 }
 0x367   : > { %v583_v20 = vadd.f32 %v582_v19, %v581_v18 }
 0x369   : > { %v584_v21 = vrot.slane %v583_v20, 2 }
 0x36b   : > { %v585_v22 = vadd.f32 %v584_v21, %v583_v20 }
 0x36d   : > { %v586_v23 = vrot.slane %v585_v22, 1 }
 0x36f   : > { %v587_v24 = vadd.f32 %v586_v23, %v585_v22 }
 0x371   : > { %816 = vrsqrt.f32 %v587_v24  ;;  %vm590_vm14 = vcmp.eq.f32.partialorder %v587_v24, inf  ;;  %v593_v27 = vand.u32 2147483648, %v587_v24  ;;  %vm592_vm15 = vcmp.eq.f32.partialorder %v587_v24, 0.0 }
 0x37e   : > { %v817_v25 = vpop.eup %816 }
 0x37f   : > { %v589_v26 = vmul.f32 %v817_v25, %v587_v24 }
 0x381   : > { %v591_v28 = vsel %vm590_vm14, %v587_v24, %v589_v26 }
 0x382   : > { %v594_v17 = vsel %vm592_vm15, %v593_v27, %v591_v28 }
 0x383   : > { %595 = vst.msk [vmem:[%s1069_s6 + $0x1] sm:$0x1] %vm523_vm5, %v594_v17 }
 0x384   : > { %859 = shalt.err (!%p856_p1)
}
 0x385   : > { %s860_s22 = scalar_lea.hbm %s1080_s10, 32  ;;  %s864_s25 = scalar_lea.hbm %s1122_s4, 96 }
 0x386   : > { %p861_p3 = scmp.ne.s32.totalorder %s1080_s10, %s860_s22  ;;  %p865_p13 = scmp.lt.s32.totalorder %s1080_s10, %s1122_s4 }
 0x387   : > { %p866_p6 = scmp.lt.s32.totalorder %s864_s25, %s860_s22 }
 0x388   : > { %p862_p4 = pnand %p861_p3, %p1133_p12 }
 0x389   : > { %p867_p10 = por %p866_p6, %p865_p13 }
 0x38a   : > { %p863_p5 = pneg %p862_p4 }
 0x38c   : > { %p868_p11 = pnand %p867_p10, %p863_p5 }
 0x38e   : > { %871 = shalt.err (!%p868_p11)
}
 0x38f   : > { %758 = dma.vmem_to_hbm [thread:$0]  (%p1133_p12), %s611_s13, 32, %s1080_s10, %s597_s11  }
 0x390 PF: > { %p769_p0 = scmp.ge.s32.totalorder %s910_s18, 2  ;;  %s622_s5 = sand.u32 1, %s898_s15  }
 0x391   : > { %p1134_p2 = scmp.ne.s32.totalorder %s1128_s28, 0  ;;  %s623_s6 = scalar_lea.sflag [#allocation4], %s622_s5 }
 0x393   : > { %p765_p7 = pnand %p769_p0, %p1134_p2 }
 0x395   : > { %p766_p8 = pneg %p765_p7 }
 0x397   : > { %893 = dma.done.wait (%p766_p8), %s623_s6, 32  }
 0x398   : > { %895 = vsyncadd (%p766_p8), %s623_s6, 4294967264  ;;  %p17_p9 = scmp.ge.s32.totalorder %s967_s21, 5   ;;  %s1135_s15 = smov %s902_s16 }
 0x399   : > { %s1136_s16 = smov %s906_s17  ;;  %s1137_s17 = smov %s979_s24 }
 0x39a   : > { %s1138_s18 = smov %s967_s21  ;;  %19 = sbr.rel (!%p17_p9) target bundleno = 5 (0x5), region = 90 }
 0x39f   :  { %628 = vsyncpa [#allocation3], 1 }
 0x3a0   :  { %630 = vsyncpa [#allocation3 + $0x1], 1 }
 0x3a1   :  { %631 = vsyncpa [#allocation4], 1 }
 0x3a2   :  { %633 = vsyncpa [#allocation4 + $0x1], 1 }

</bundles_post_ra>
